<compile_context>
chip_gen: v7x
topology: tpu7x:2x2x1
jax: 0.10.0
libtpu: 0.0.40
codegen_flags: <defaults>
</compile_context>

<pallas_src>
import functools

import jax
import jax.numpy as jnp
import numpy as np
from jax.experimental import pallas as pl
from jax.experimental.pallas import tpu as pltpu

EMBED_DIM = 300
FEATURE_DIM = EMBED_DIM * 3      # 900 input channels of the Conv1d
FILTER_NUM = 128                 # conv output channels
KERNEL_SIZE = 3
NUM_CLASSES = 4
S_TILE_MAX = 256                 # max seq rows per grid step
VMEM_BUDGET = 12 * 1024 * 1024   # conservative per-step VMEM budget (bytes)


def _round_up(x, m):
    return (x + m - 1) // m * m


def _choose_s_tile(seq, batch):
    """Largest multiple-of-8 seq tile that keeps per-step VMEM under budget."""
    per_seq_row = (
        batch * (3 * 2 * EMBED_DIM * 2            # 3 bf16 inputs, double-buffered
                 + KERNEL_SIZE * FILTER_NUM * 4    # f32 tap slab
                 + FILTER_NUM * 4)                 # f32 activation slab
        + 2 * 2 * FILTER_NUM * 4                   # pooled output, double-buffered
    )
    cap = max(8, (VMEM_BUDGET // per_seq_row) // 8 * 8)
    return int(min(S_TILE_MAX, cap, _round_up(seq, 8)))


def _joint_cnn_kernel(word_ref, pos1_ref, pos2_ref, w_ref, bconv_ref, out_ref,
                      *, conv_len):
    # word/pos1/pos2: (batch, s_tile, 300)  bf16   (batch = conv length L)
    # w_ref:          (3, 300, 3*128)       bf16   [embedding, channel, tap*128+out]
    # bconv_ref:      (1, 128)              f32
    # out_ref:        (s_tile, 256)         f32    [avg_pool | max_pool]
    l_in = conv_len
    l_out = l_in - (KERNEL_SIZE - 1)
    s_tile = word_ref.shape[1]

    def tap_matmul(x_ref, w):
        x2 = x_ref[...].reshape(l_in * s_tile, EMBED_DIM)      # (L*s_tile, 300)
        return jnp.dot(x2, w, preferred_element_type=jnp.float32)

    # One big MXU matmul per embedding stream; all 3 conv taps packed on lanes.
    y = tap_matmul(word_ref, w_ref[0])
    y = y + tap_matmul(pos1_ref, w_ref[1])
    y = y + tap_matmul(pos2_ref, w_ref[2])
    y = y.reshape(l_in, s_tile, KERNEL_SIZE * FILTER_NUM)       # (L, s_tile, 384)

    # Valid conv outputs via shifted adds (only valid positions reach pooling).
    conv = (y[0:l_out, :, 0:FILTER_NUM]
            + y[1:1 + l_out, :, FILTER_NUM:2 * FILTER_NUM]
            + y[2:2 + l_out, :, 2 * FILTER_NUM:3 * FILTER_NUM])  # (l_out, s_tile, 128)

    bias = bconv_ref[...].reshape(1, 1, FILTER_NUM)
    act = jnp.maximum(conv + bias, 0.0)                          # bias + ReLU

    avg_pool = jnp.sum(act, axis=0) * (1.0 / float(l_out))       # (s_tile, 128)
    max_pool = jnp.max(act, axis=0)                              # (s_tile, 128)

    out_ref[:, 0:FILTER_NUM] = avg_pool.astype(out_ref.dtype)
    out_ref[:, FILTER_NUM:2 * FILTER_NUM] = max_pool.astype(out_ref.dtype)


def joint_cnn_pallas(params, texts, entity_1, entity_2):
    """Forward pass. texts/entity_1/entity_2 are int32 arrays of shape (batch, seq)."""
    batch, seq = texts.shape
    assert batch >= KERNEL_SIZE, "conv length (batch) must be >= kernel size"

    s_tile = _choose_s_tile(seq, batch)
    seq_pad = _round_up(seq, s_tile)
    pad = seq_pad - seq

    def pad_idx(idx):
        return jnp.pad(idx, ((0, 0), (0, pad))) if pad else idx

    # bf16 embedding gathers directly in (B, S_pad, 300) order -- no activation
    # transpose and no 900-wide concat materialized in HBM.
    word = params["word_emb"].astype(jnp.bfloat16)[pad_idx(texts)]
    pos1 = params["pos1_emb"].astype(jnp.bfloat16)[pad_idx(entity_1)]
    pos2 = params["pos2_emb"].astype(jnp.bfloat16)[pad_idx(entity_2)]

    # Conv weight (k, 900, 128) -> (embedding, 300, tap*128+out), bf16.
    w = params["wconv"].reshape(KERNEL_SIZE, 3, EMBED_DIM, FILTER_NUM)
    w = jnp.transpose(w, (1, 2, 0, 3)).reshape(
        3, EMBED_DIM, KERNEL_SIZE * FILTER_NUM).astype(jnp.bfloat16)

    kernel = functools.partial(_joint_cnn_kernel, conv_len=batch)
    grid = (seq_pad // s_tile,)

    emb_spec = pl.BlockSpec((batch, s_tile, EMBED_DIM), lambda i: (0, i, 0))
    pooled = pl.pallas_call(
        kernel,
        out_shape=jax.ShapeDtypeStruct((seq_pad, 2 * FILTER_NUM), jnp.float32),
        grid=grid,
        in_specs=[
            emb_spec, emb_spec, emb_spec,
            pl.BlockSpec((3, EMBED_DIM, KERNEL_SIZE * FILTER_NUM),
                         lambda i: (0, 0, 0)),
            pl.BlockSpec((1, FILTER_NUM), lambda i: (0, 0)),
        ],
        out_specs=pl.BlockSpec((s_tile, 2 * FILTER_NUM), lambda i: (i, 0)),
        compiler_params=pltpu.CompilerParams(
            dimension_semantics=("parallel",),
            vmem_limit_bytes=32 * 1024 * 1024),
    )(word, pos1, pos2, w, params["bconv"])

    pooled = pooled[:seq]                                        # (S, 256) f32
    # Tiny FC (256 x 4) done once in XLA: keeps the kernel output lane-dense.
    return pooled @ params["wfc"] + params["bfc"]                # (S, 4)


def joint_cnn_reference(params, texts, entity_1, entity_2,
                        match_kernel_precision=True):
    """Pure-JAX reference mirroring the PyTorch forward exactly.

    With match_kernel_precision=True the 900-wide features and conv weights are
    rounded to bf16 (the kernel's deliberate input precision); all arithmetic
    stays in f32, matching the kernel's f32 MXU accumulation.
    """
    word = params["word_emb"][texts]
    pos1 = params["pos1_emb"][entity_1]
    pos2 = params["pos2_emb"][entity_2]
    feat = jnp.concatenate([word, pos1, pos2], axis=2)      # (B, S, 900)
    w = params["wconv"]                                     # (3, 900, 128)
    if match_kernel_precision:
        feat = feat.astype(jnp.bfloat16).astype(jnp.float32)
        w = w.astype(jnp.bfloat16).astype(jnp.float32)
    inp = jnp.transpose(feat, (1, 2, 0))                    # (S, 900, B)
    l_out = inp.shape[2] - (KERNEL_SIZE - 1)
    taps = []
    for l in range(l_out):
        acc = sum(jnp.einsum("sc,co->so", inp[:, :, l + k], w[k])
                  for k in range(KERNEL_SIZE))
        taps.append(acc)
    conv = jnp.stack(taps, axis=1) + params["bconv"]        # (S, Lout, 128)
    conv = jnp.maximum(conv, 0.0)                           # ReLU
    avg_pool = jnp.mean(conv, axis=1)                       # (S, 128)
    max_pool = jnp.max(conv, axis=1)                        # (S, 128)
    out = jnp.concatenate([avg_pool, max_pool], axis=1)     # (S, 256)
    return out @ params["wfc"] + params["bfc"]              # (S, 4)


def init_params(key, vocab_size):
    ks = jax.random.split(key, 7)
    scale = 0.02
    return {
        "word_emb": scale * jax.random.normal(ks[0], (vocab_size, EMBED_DIM), jnp.float32),
        "pos1_emb": scale * jax.random.normal(ks[1], (vocab_size, EMBED_DIM), jnp.float32),
        "pos2_emb": scale * jax.random.normal(ks[2], (vocab_size, EMBED_DIM), jnp.float32),
        # Conv1d weight stored in (k, in_ch, out_ch) layout (torch weight permuted).
        "wconv": scale * jax.random.normal(ks[3], (KERNEL_SIZE, FEATURE_DIM, FILTER_NUM), jnp.float32),
        "bconv": scale * jax.random.normal(ks[4], (1, FILTER_NUM), jnp.float32),
        # Linear weight stored as (in, out) = torch weight.T.
        "wfc": scale * jax.random.normal(ks[5], (2 * FILTER_NUM, NUM_CLASSES), jnp.float32),
        "bfc": scale * jax.random.normal(ks[6], (1, NUM_CLASSES), jnp.float32),
    }


if __name__ == "__main__":
    vocab_size = 32
    key = jax.random.PRNGKey(0)
    kp, kd = jax.random.split(key)
    params = init_params(kp, vocab_size)

    # Case 1: tiny (matches the module's intended small shapes).
    # Case 2: longer seq so the kernel exercises seq padding and a >1 grid.
    for batch, seq in [(4, 8), (5, 300)]:
        k1, k2, k3, kd = jax.random.split(kd, 4)
        texts = jax.random.randint(k1, (batch, seq), 0, vocab_size, jnp.int32)
        entity_1 = jax.random.randint(k2, (batch, seq), 0, vocab_size, jnp.int32)
        entity_2 = jax.random.randint(k3, (batch, seq), 0, vocab_size, jnp.int32)

        logits = jax.block_until_ready(
            joint_cnn_pallas(params, texts, entity_1, entity_2))
        ref = jax.block_until_ready(
            joint_cnn_reference(params, texts, entity_1, entity_2))

        assert logits.shape == (seq, NUM_CLASSES), logits.shape
        np.testing.assert_allclose(np.asarray(logits), np.asarray(ref),
                                   rtol=1e-3, atol=1e-4)

    print("KERNEL_OK")
</pallas_src>

<mosaic_0001>
module attributes {stable_mosaic.version = 11 : i64} {
  func.func @_joint_cnn_kernel(%arg0: i32, %arg1: memref<4x8x300xbf16, #tpu.memory_space<vmem>>, %arg2: memref<4x8x300xbf16, #tpu.memory_space<vmem>>, %arg3: memref<4x8x300xbf16, #tpu.memory_space<vmem>>, %arg4: memref<3x300x384xbf16, #tpu.memory_space<vmem>>, %arg5: memref<1x128xf32, #tpu.memory_space<vmem>>, %arg6: memref<8x256xf32, #tpu.memory_space<vmem>>) attributes {dimension_semantics = [#tpu.dimension_semantics<parallel>], iteration_bounds = array<i64: 1>, scalar_prefetch = 0 : i64, scratch_operands = 0 : i64, tpu.core_type = #tpu.core_type<tc>, window_params = [{transform_indices = @transform_0, window_bounds = array<i64: 4, 8, 300>}, {transform_indices = @transform_1, window_bounds = array<i64: 4, 8, 300>}, {transform_indices = @transform_2, window_bounds = array<i64: 4, 8, 300>}, {pipeline_mode = #tpu.pipeline_mode<synchronous>, transform_indices = @transform_3, window_bounds = array<i64: 3, 300, 384>}, {pipeline_mode = #tpu.pipeline_mode<synchronous>, transform_indices = @transform_4, window_bounds = array<i64: 1, 128>}, {transform_indices = @transform_5, window_bounds = array<i64: 8, 256>}]} {
    %c0 = arith.constant 0 : index
    %c0_0 = arith.constant 0 : index
    %c0_1 = arith.constant 0 : index
    %0 = vector.load %arg4[%c0, %c0_0, %c0_1] : memref<3x300x384xbf16, #tpu.memory_space<vmem>>, vector<1x300x384xbf16>
    %1 = vector.shape_cast %0 : vector<1x300x384xbf16> to vector<300x384xbf16>
    %c0_2 = arith.constant 0 : index
    %c0_3 = arith.constant 0 : index
    %c0_4 = arith.constant 0 : index
    %2 = vector.load %arg1[%c0_2, %c0_3, %c0_4] : memref<4x8x300xbf16, #tpu.memory_space<vmem>>, vector<4x8x300xbf16>
    %3 = vector.shape_cast %2 : vector<4x8x300xbf16> to vector<32x300xbf16>
    %cst = arith.constant dense<0.000000e+00> : vector<32x384xf32>
    %4 = tpu.matmul %3, %1, %cst {dimension_numbers = #tpu.dot_dimension_numbers<[1], [0], [0], [1], [0, 0, 1, 1], [], []>} : vector<32x300xbf16>, vector<300x384xbf16>, vector<32x384xf32> -> vector<32x384xf32>
    %c1 = arith.constant 1 : index
    %c0_5 = arith.constant 0 : index
    %c0_6 = arith.constant 0 : index
    %5 = vector.load %arg4[%c1, %c0_5, %c0_6] : memref<3x300x384xbf16, #tpu.memory_space<vmem>>, vector<1x300x384xbf16>
    %6 = vector.shape_cast %5 : vector<1x300x384xbf16> to vector<300x384xbf16>
    %c0_7 = arith.constant 0 : index
    %c0_8 = arith.constant 0 : index
    %c0_9 = arith.constant 0 : index
    %7 = vector.load %arg2[%c0_7, %c0_8, %c0_9] : memref<4x8x300xbf16, #tpu.memory_space<vmem>>, vector<4x8x300xbf16>
    %8 = vector.shape_cast %7 : vector<4x8x300xbf16> to vector<32x300xbf16>
    %cst_10 = arith.constant dense<0.000000e+00> : vector<32x384xf32>
    %9 = tpu.matmul %8, %6, %cst_10 {dimension_numbers = #tpu.dot_dimension_numbers<[1], [0], [0], [1], [0, 0, 1, 1], [], []>} : vector<32x300xbf16>, vector<300x384xbf16>, vector<32x384xf32> -> vector<32x384xf32>
    %10 = arith.addf %4, %9 : vector<32x384xf32>
    %c2 = arith.constant 2 : index
    %c0_11 = arith.constant 0 : index
    %c0_12 = arith.constant 0 : index
    %11 = vector.load %arg4[%c2, %c0_11, %c0_12] : memref<3x300x384xbf16, #tpu.memory_space<vmem>>, vector<1x300x384xbf16>
    %12 = vector.shape_cast %11 : vector<1x300x384xbf16> to vector<300x384xbf16>
    %c0_13 = arith.constant 0 : index
    %c0_14 = arith.constant 0 : index
    %c0_15 = arith.constant 0 : index
    %13 = vector.load %arg3[%c0_13, %c0_14, %c0_15] : memref<4x8x300xbf16, #tpu.memory_space<vmem>>, vector<4x8x300xbf16>
    %14 = vector.shape_cast %13 : vector<4x8x300xbf16> to vector<32x300xbf16>
    %cst_16 = arith.constant dense<0.000000e+00> : vector<32x384xf32>
    %15 = tpu.matmul %14, %12, %cst_16 {dimension_numbers = #tpu.dot_dimension_numbers<[1], [0], [0], [1], [0, 0, 1, 1], [], []>} : vector<32x300xbf16>, vector<300x384xbf16>, vector<32x384xf32> -> vector<32x384xf32>
    %16 = arith.addf %10, %15 : vector<32x384xf32>
    %17 = vector.shape_cast %16 : vector<32x384xf32> to vector<4x8x384xf32>
    %18 = vector.extract_strided_slice %17 {offsets = [0, 0, 0], sizes = [2, 8, 128], strides = [1, 1, 1]} : vector<4x8x384xf32> to vector<2x8x128xf32>
    %19 = vector.extract_strided_slice %17 {offsets = [1, 0, 128], sizes = [2, 8, 128], strides = [1, 1, 1]} : vector<4x8x384xf32> to vector<2x8x128xf32>
    %20 = arith.addf %18, %19 : vector<2x8x128xf32>
    %21 = vector.extract_strided_slice %17 {offsets = [2, 0, 256], sizes = [2, 8, 128], strides = [1, 1, 1]} : vector<4x8x384xf32> to vector<2x8x128xf32>
    %22 = arith.addf %20, %21 : vector<2x8x128xf32>
    %c0_17 = arith.constant 0 : index
    %c0_18 = arith.constant 0 : index
    %23 = vector.load %arg5[%c0_17, %c0_18] : memref<1x128xf32, #tpu.memory_space<vmem>>, vector<1x128xf32>
    %24 = vector.shape_cast %23 : vector<1x128xf32> to vector<1x1x128xf32>
    %25 = vector.broadcast %24 : vector<1x1x128xf32> to vector<2x8x128xf32>
    %26 = arith.addf %22, %25 : vector<2x8x128xf32>
    %cst_19 = arith.constant 0.000000e+00 : f32
    %27 = vector.broadcast %cst_19 : f32 to vector<2x8x128xf32>
    %28 = arith.maximumf %26, %27 : vector<2x8x128xf32>
    %cst_20 = arith.constant dense<0.000000e+00> : vector<8x128xf32>
    %29 = vector.multi_reduction <add>, %28, %cst_20 [0] : vector<2x8x128xf32> to vector<8x128xf32>
    %cst_21 = arith.constant 5.000000e-01 : f32
    %30 = vector.broadcast %cst_21 : f32 to vector<8x128xf32>
    %31 = arith.mulf %29, %30 : vector<8x128xf32>
    %cst_22 = arith.constant dense<0xFF800000> : vector<8x128xf32>
    %32 = vector.multi_reduction <maximumf>, %28, %cst_22 [0] : vector<2x8x128xf32> to vector<8x128xf32>
    %c0_23 = arith.constant 0 : index
    %c0_24 = arith.constant 0 : index
    %33 = vector.load %arg6[%c0_23, %c0_24] : memref<8x256xf32, #tpu.memory_space<vmem>>, vector<8x128xf32>
    tpu.vector_store %arg6[%c0_23, %c0_24], %31 {strides = array<i32>} : memref<8x256xf32, #tpu.memory_space<vmem>>, vector<8x128xf32>,
    %c0_25 = arith.constant 0 : index
    %c128 = arith.constant 128 : index
    %34 = vector.load %arg6[%c0_25, %c128] : memref<8x256xf32, #tpu.memory_space<vmem>>, vector<8x128xf32>
    tpu.vector_store %arg6[%c0_25, %c128], %32 {strides = array<i32>} : memref<8x256xf32, #tpu.memory_space<vmem>>, vector<8x128xf32>,
    return
  }
  func.func @transform_0(%arg0: i32) -> (i32, i32, i32) {
    %c0_i32 = arith.constant 0 : i32
    %c0_i32_0 = arith.constant 0 : i32
    %c0_i32_1 = arith.constant 0 : i32
    return %c0_i32, %arg0, %c0_i32_0 : i32, i32, i32
  }
  func.func @transform_1(%arg0: i32) -> (i32, i32, i32) {
    %c0_i32 = arith.constant 0 : i32
    %c0_i32_0 = arith.constant 0 : i32
    %c0_i32_1 = arith.constant 0 : i32
    return %c0_i32, %arg0, %c0_i32_0 : i32, i32, i32
  }
  func.func @transform_2(%arg0: i32) -> (i32, i32, i32) {
    %c0_i32 = arith.constant 0 : i32
    %c0_i32_0 = arith.constant 0 : i32
    %c0_i32_1 = arith.constant 0 : i32
    return %c0_i32, %arg0, %c0_i32_0 : i32, i32, i32
  }
  func.func @transform_3(%arg0: i32) -> (i32, i32, i32) {
    %c0_i32 = arith.constant 0 : i32
    %c0_i32_0 = arith.constant 0 : i32
    %c0_i32_1 = arith.constant 0 : i32
    %c0_i32_2 = arith.constant 0 : i32
    return %c0_i32, %c0_i32_0, %c0_i32_1 : i32, i32, i32
  }
  func.func @transform_4(%arg0: i32) -> (i32, i32) {
    %c0_i32 = arith.constant 0 : i32
    %c0_i32_0 = arith.constant 0 : i32
    %c0_i32_1 = arith.constant 0 : i32
    return %c0_i32, %c0_i32_0 : i32, i32
  }
  func.func @transform_5(%arg0: i32) -> (i32, i32) {
    %c0_i32 = arith.constant 0 : i32
    %c0_i32_0 = arith.constant 0 : i32
    return %arg0, %c0_i32 : i32, i32
  }
}

</mosaic_0001>

<bundles_post_ra>
// kernel: tpu_custom_call.1
= control target key start
LH: loop header
LB: loop body
LE: loop exit
PB: predicated region body
PF: predicated region fallthrough
CT: control target
= control target key end

     0   :  { %10 = vsyncpa [#allocation3], 0  ;;  %s2934_s0 = inlined_call_operand.hbm [shape: bf16[4,8,300], index: 0, kind: input, shape index: {}]   ;;  %s2935_s1 = inlined_call_operand.hbm [shape: bf16[4,8,300], index: 1, kind: input, shape index: {}]   ;;  %s2936_s2 = inlined_call_operand.hbm [shape: bf16[4,8,300], index: 2, kind: input, shape index: {}]   ;;  %s2937_s3 = inlined_call_operand.hbm [shape: bf16[3,300,384], index: 3, kind: input, shape index: {}]   ;;  %s2938_s4 = inlined_call_operand.vmem [shape: f32[1,128], index: 4, kind: input, shape index: {}]   ;;  %s2939_s5 = inlined_call_operand.hbm [shape: f32[8,256], index: 5, kind: output, shape index: {}]  }
   0x1   :  { %11 = vsyncpa [#allocation6], 0 }
   0x2   :  { %12 = vsyncpa [#allocation9], 0 }
   0x3   :  { %13 = vsyncpa [#allocation4], 0  ;;  %s2741_s18 = smov [#allocation5]   ;;  %s2742_s20 = smov [#allocation2]  }
   0x4   :  { %s31_s19 = sshll.u32 %s2741_s18, 4  ;;  %s19_s21 = sshll.u32 %s2742_s20, 4  ;;  %s32_s19 = int_to_ptr.vmem [resolvable:$true] %s31_s19  ;;  %s2779_s21 = int_to_ptr.vmem [resolvable:$true] %s19_s21 }
   0x5   :  { %s2623_s24 = scalar_lea.hbm %s2935_s1, 768 }
   0x6   :  { %p2624_p0 = scmp.ne.s32.totalorder %s2935_s1, %s2623_s24  ;;  %p2627_p1 = scmp.lt.u32.totalorder %s2623_s24, %s2935_s1 }
   0x8   :  { %p2629_p2 = pnand %p2627_p1, %p2624_p0 }
   0xa   :  { %2632 = shalt.err (!%p2629_p2)
}
   0xb   :  { %s2633_s29 = scalar_lea.vmem %s32_s19, 768  ;;  %p2638_p4 = scmp.lt.s32.totalorder %s32_s19, %s32_s19 }
   0xc   :  { %p2634_p3 = scmp.ne.s32.totalorder %s32_s19, %s2633_s29  ;;  %p2639_p5 = scmp.lt.s32.totalorder %s2633_s29, %s2633_s29 }
   0xe   :  { %p2640_p6 = por %p2639_p5, %p2638_p4 }
  0x10   :  { %p2641_p7 = pnand %p2640_p6, %p2634_p3 }
  0x12   :  { %2644 = shalt.err (!%p2641_p7)
}
  0x13   :  { %s2743_s30 = smov 192   ;;  %s2744_s6 = smov 12  }
  0x14   :  { %37 = dma.hbm_to_vmem [thread:$0]  %s2935_s1, 768, %s32_s19, [#allocation6], %s2743_s30, %s2743_s30, %s2744_s6  }
  0x15   :  { %s2645_s11 = scalar_lea.hbm %s2934_s0, 768 }
  0x16   :  { %p2646_p8 = scmp.ne.s32.totalorder %s2934_s0, %s2645_s11  ;;  %p2649_p9 = scmp.lt.u32.totalorder %s2645_s11, %s2934_s0 }
  0x18   :  { %p2651_p10 = pnand %p2649_p9, %p2646_p8 }
  0x1a   :  { %2654 = shalt.err (!%p2651_p10)
}
  0x1b   :  { %s2655_s16 = scalar_lea.vmem %s2779_s21, 768  ;;  %p2660_p12 = scmp.lt.s32.totalorder %s2779_s21, %s2779_s21 }
  0x1c   :  { %p2656_p11 = scmp.ne.s32.totalorder %s2779_s21, %s2655_s16  ;;  %p2661_p13 = scmp.lt.s32.totalorder %s2655_s16, %s2655_s16 }
  0x1e   :  { %p2662_p0 = por %p2661_p13, %p2660_p12 }
  0x20   :  { %p2663_p1 = pnand %p2662_p0, %p2656_p11 }
  0x22   :  { %2666 = shalt.err (!%p2663_p1)
}
  0x23   :  { %25 = dma.hbm_to_vmem [thread:$0]  %s2934_s0, 768, %s2779_s21, [#allocation3], %s2743_s30, %s2743_s30, %s2744_s6  }
  0x24   :  { %s2745_s18 = smov [#allocation7]   ;;  %s2746_s20 = smov [#allocation8]  }
  0x25   :  { %s43_s19 = sshll.u32 %s2745_s18, 4  ;;  %s55_s22 = sshll.u32 %s2746_s20, 4  ;;  %s44_s19 = int_to_ptr.vmem [resolvable:$true] %s43_s19  ;;  %s2816_s22 = int_to_ptr.vmem [resolvable:$true] %s55_s22 }
  0x26   :  { %s2667_s25 = scalar_lea.hbm %s2936_s2, 768 }
  0x27   :  { %p2668_p2 = scmp.ne.s32.totalorder %s2936_s2, %s2667_s25  ;;  %p2671_p3 = scmp.lt.u32.totalorder %s2667_s25, %s2936_s2 }
  0x29   :  { %p2673_p4 = pnand %p2671_p3, %p2668_p2 }
  0x2b   :  { %2676 = shalt.err (!%p2673_p4)
}
  0x2c   :  { %s2677_s0 = scalar_lea.vmem %s44_s19, 768  ;;  %p2682_p6 = scmp.lt.s32.totalorder %s44_s19, %s44_s19 }
  0x2d   :  { %p2678_p5 = scmp.ne.s32.totalorder %s44_s19, %s2677_s0  ;;  %p2683_p7 = scmp.lt.s32.totalorder %s2677_s0, %s2677_s0 }
  0x2f   :  { %p2684_p8 = por %p2683_p7, %p2682_p6 }
  0x31   :  { %p2685_p9 = pnand %p2684_p8, %p2678_p5 }
  0x33   :  { %2688 = shalt.err (!%p2685_p9)
}
  0x34   :  { %49 = dma.hbm_to_vmem [thread:$0]  %s2936_s2, 768, %s44_s19, [#allocation6], %s2743_s30, %s2743_s30, %s2744_s6  }
  0x35   :  { %s2689_s10 = scalar_lea.hbm %s2937_s3, 21888 }
  0x36   :  { %p2690_p10 = scmp.ne.s32.totalorder %s2937_s3, %s2689_s10  ;;  %p2693_p11 = scmp.lt.u32.totalorder %s2689_s10, %s2937_s3 }
  0x38   :  { %p2695_p12 = pnand %p2693_p11, %p2690_p10 }
  0x3a   :  { %2698 = shalt.err (!%p2695_p12)
}
  0x3b   :  { %s2699_s15 = scalar_lea.vmem %s2816_s22, 21888  ;;  %p2704_p0 = scmp.lt.s32.totalorder %s2816_s22, %s2816_s22 }
  0x3c   :  { %p2700_p13 = scmp.ne.s32.totalorder %s2816_s22, %s2699_s15  ;;  %p2705_p1 = scmp.lt.s32.totalorder %s2699_s15, %s2699_s15 }
  0x3e   :  { %p2706_p2 = por %p2705_p1, %p2704_p0 }
  0x40   :  { %p2707_p3 = pnand %p2706_p2, %p2700_p13 }
  0x42   :  { %2710 = shalt.err (!%p2707_p3)
}
  0x43   :  { %61 = dma.hbm_to_vmem [thread:$0]  %s2937_s3, 21888, %s2816_s22, [#allocation9], %s2743_s30, %s2743_s30, %s2744_s6  }
  0x44   :  { %2733 = dma.done.wait [#allocation3], 768  }
  0x45   :  { %2734 = vsyncadd [#allocation3], 4294966528 }
  0x46   :  { %2735 = dma.done.wait [#allocation6], 1536  }
  0x47   :  { %2736 = vsyncadd [#allocation6], 4294965760 }
  0x48   :  { %2737 = dma.done.wait [#allocation9], 21888  }
  0x49   :  { %2738 = vsyncadd [#allocation9], 4294945408  ;;  %v2747_v0 = vmov 0   ;;  %v2371_v1 = vld [vmem:[#allocation8 + $0x1cc] ss:$12 sps:$4 sm:$0xff]   ;;  %vm584_vm0 = vcmask 1045504  }
  0x4a   :  { %675 = vmatprep.mubr.bf16.mxu0 %v2747_v0  ;;  %v2373_v2 = vld [vmem:[#allocation8 + $0x34c] ss:$12 sps:$4 sm:$0xff]   ;;  %594 = vmatprep.subr.bf16.mxu1 %v2371_v1  ;;  %v2375_v3 = vld [vmem:[#allocation8 + $0x1c8] ss:$12 sps:$4 sm:$0xff]   ;;  %v2377_v5 = vld [vmem:[#allocation8 + $0x1e4] ss:$12 sps:$4 sm:$0xff]  }
  0x4b   :  { %v2376_v4 = vld [vmem:[#allocation8 + $0x348] ss:$12 sps:$4 sm:$0xff]   ;;  %643 = vmatprep.subr.bf16.mxu0 %v2373_v2  ;;  %595 = vmatpush1.bf16.msra.mxu1 %v2375_v3  ;;  %v2379_v6 = vld [vmem:[#allocation8 + $0x364] ss:$12 sps:$4 sm:$0xff]   ;;  %v2381_v7 = vld [vmem:[#allocation8 + $0x1e0] ss:$12 sps:$4 sm:$0xff]  }
  0x4c   :  { %644 = vmatpush1.bf16.msra.mxu0 %v2376_v4  ;;  %596 = vmatprep.subr.bf16.mxu1 %v2377_v5  ;;  %v2382_v8 = vld [vmem:[#allocation8 + $0x360] ss:$12 sps:$4 sm:$0xff]   ;;  %v2383_v9 = vld [vmem:[#allocation8 + $0x1fc] ss:$12 sps:$4 sm:$0xff]   ;;  %v2387_v11 = vld [vmem:[#allocation8 + $0x1f8] ss:$12 sps:$4 sm:$0xff]  }
  0x4d   :  { %645 = vmatprep.subr.bf16.mxu0 %v2379_v6  ;;  %v2385_v10 = vld [vmem:[#allocation8 + $0x37c] ss:$12 sps:$4 sm:$0x3f]   ;;  %v2388_v12 = vld [vmem:[#allocation8 + $0x378] ss:$12 sps:$4 sm:$0x3f]  }
  0x4e   :  { %v2389_v13 = vld [vmem:[#allocation8 + $0x214] ss:$12 sps:$4 sm:$0xff]   ;;  %v586_v14 = vsel %vm584_vm0, %v2388_v12, 0  ;;  %vm577_vm1 = vcmask 359424   ;;  %v2392_v16 = vld [vmem:[#allocation8 + $0x350] ss:$12 sps:$4 sm:$0xff]  }
  0x4f   :  { %597 = vmatpush1.bf16.msra.mxu1 %v2381_v7  ;;  %v2391_v15 = vld [vmem:[#allocation5 + $0x8] ss:$12 sps:$4 sm:$0xff]   ;;  %v2393_v17 = vld [vmem:[#allocation8 + $0x210] ss:$12 sps:$4 sm:$0xff]   ;;  %v2394_v18 = vld [vmem:[#allocation8 + $0x22c] ss:$12 sps:$4 sm:$0xff]  }
  0x50   :  { %646 = vmatpush1.bf16.msra.mxu0 %v2382_v8  ;;  %598 = vmatprep.subr.bf16.mxu1 %v2383_v9  ;;  %v2397_v19 = vld [vmem:[#allocation8 + $0x368] ss:$12 sps:$4 sm:$0xff]   ;;  %v2398_v21 = vld [vmem:[#allocation8 + $0x244] ss:$12 sps:$4 sm:$0xff]   ;;  %v2400_v23 = vld [vmem:[#allocation5 + $0x20] ss:$12 sps:$4 sm:$0xff]  }
  0x51   :  { %2053 = vmatprep.subr.msk.bf16.mxu0 %vm584_vm0, %v2385_v10  ;;  %v2396_v20 = vld [vmem:[#allocation8 + $0x228] ss:$12 sps:$4 sm:$0xff]   ;;  %v2402_v22 = vld [vmem:[#allocation8 + $0x380] ss:$12 sps:$4 sm:$0x3f]   ;;  %s2748_s6 = smov [#allocation10]  }
  0x52   :  { %v2401_v24 = vld [vmem:[#allocation8 + $0x240] ss:$12 sps:$4 sm:$0xff]   ;;  %v2403_v25 = vld [vmem:[#allocation8 + $0x25c] ss:$12 sps:$4 sm:$0xff]   ;;  %v592_v26 = vsel %vm584_vm0, %v2402_v22, 0  ;;  %s1979_s1 = sshll.u32 %s2748_s6, 4  ;;  %s1980_s1 = int_to_ptr.vmem [resolvable:$true] %s1979_s1 }
  0x53   :  { %599 = vmatpush1.bf16.msra.mxu1 %v2387_v11  ;;  %v2408_v27 = vld [vmem:[#allocation8 + $0x4] ss:$12 sps:$4 sm:$0xff]   ;;  %v2409_v29 = vld [vmem:[#allocation8 + $0x274] ss:$12 sps:$4 sm:$0xff]   ;;  %v2414_v32 = vld [vmem:[#allocation8 + $0x1c] ss:$12 sps:$4 sm:$0xff]   ;;  %p2716_p5 = scmp.lt.s32.totalorder %s1980_s1, %s1980_s1 }
  0x54   :  { %648 = vmatpush1.bf16.msra.mxu0 %v586_v14  ;;  %600 = vmatprep.subr.bf16.mxu1 %v2389_v13  ;;  %v2405_v28 = vld [vmem:[#allocation8 + $0x258] ss:$12 sps:$4 sm:$0xff]   ;;  %v2406_v30 = vld [vmem:[#allocation8] ss:$12 sps:$4 sm:$0xff]   ;;  %v2411_v31 = vld [vmem:[#allocation8 + $0x270] ss:$12 sps:$4 sm:$0xff]  }
  0x55   :  { %2294 = vmatprep.subr.bf16.mxu0 %v2392_v16  ;;  %v2415_v33 = vld [vmem:[#allocation8 + $0x28c] ss:$12 sps:$4 sm:$0xff]   ;;  %v2417_v35 = vld [vmem:[#allocation8 + $0x288] ss:$12 sps:$4 sm:$0xff]   ;;  %v2421_v37 = vld [vmem:[#allocation8 + $0x2a4] ss:$12 sps:$4 sm:$0xff]  }
  0x56   :  { %v2412_v34 = vld [vmem:[#allocation8 + $0x18] ss:$12 sps:$4 sm:$0xff]   ;;  %v2420_v36 = vld [vmem:[#allocation8 + $0x34] ss:$12 sps:$4 sm:$0xff]   ;;  %v2418_v38 = vld [vmem:[#allocation8 + $0x30] ss:$12 sps:$4 sm:$0xff]  }
  0x57   :  { %2054 = vmatmul.mubr.msk.bf16.vlgmr.msra.gmra.mrb[0].mxu0 %vm577_vm1, %v2391_v15  ;;  %601 = vmatpush1.bf16.msra.mxu1 %v2393_v17  ;;  %v2423_v39 = vld [vmem:[#allocation8 + $0x2a0] ss:$12 sps:$4 sm:$0xff]   ;;  %v2427_v41 = vld [vmem:[#allocation8 + $0x2bc] ss:$12 sps:$4 sm:$0xff]   ;;  %v2429_v43 = vld [vmem:[#allocation8 + $0x2b8] ss:$12 sps:$4 sm:$0xff]  }
  0x58   :  { %2295 = vmatpush3.bf16.msra.mxu0 %v2392_v16  ;;  %602 = vmatprep.subr.bf16.mxu1 %v2394_v18  ;;  %v2426_v40 = vld [vmem:[#allocation8 + $0x4c] ss:$12 sps:$4 sm:$0xff]   ;;  %v2424_v42 = vld [vmem:[#allocation8 + $0x48] ss:$12 sps:$4 sm:$0xff]   ;;  %v2432_v44 = vld [vmem:[#allocation8 + $0x64] ss:$12 sps:$4 sm:$0xff]  }
  0x59   :  { %2296 = vmatprep.subr.bf16.mxu0 %v2397_v19  ;;  %684 = vmatprep.mubr.bf16.mxu0 %v2747_v0  ;;  %v2433_v45 = vld [vmem:[#allocation8 + $0x2d4] ss:$12 sps:$4 sm:$0xff]   ;;  %v2863_v47 = vld [vmem:[#allocation5 + $0x4] ss:$12 sps:$4 sm:$0xff]   ;;  %v2438_v49 = vld [vmem:[#allocation8 + $0x7c] ss:$12 sps:$4 sm:$0xff]  }
  0x5a   :  { %v2430_v46 = vld [vmem:[#allocation8 + $0x60] ss:$12 sps:$4 sm:$0xff]   ;;  %v2435_v48 = vld [vmem:[#allocation8 + $0x2d0] ss:$12 sps:$4 sm:$0xff]   ;;  %v2436_v51 = vld [vmem:[#allocation8 + $0x78] ss:$12 sps:$4 sm:$0xff]   ;;  %626 = vmatprep.mubr.bf16.mxu1 %v2863_v47 }
  0x5b   :  { %603 = vmatpush1.bf16.msra.mxu1 %v2396_v20  ;;  %v2439_v50 = vld [vmem:[#allocation8 + $0x2ec] ss:$12 sps:$4 sm:$0xff]   ;;  %v2441_v52 = vld [vmem:[#allocation8 + $0x2e8] ss:$12 sps:$4 sm:$0xff]   ;;  %v2445_v54 = vld [vmem:[#allocation8 + $0x304] ss:$12 sps:$4 sm:$0xff]  }
  0x5c   :  { %2297 = vmatpush3.bf16.msra.mxu0 %v2397_v19  ;;  %604 = vmatprep.subr.bf16.mxu1 %v2398_v21  ;;  %v2444_v53 = vld [vmem:[#allocation8 + $0x94] ss:$12 sps:$4 sm:$0xff]   ;;  %v2442_v55 = vld [vmem:[#allocation8 + $0x90] ss:$12 sps:$4 sm:$0xff]   ;;  %v2450_v57 = vld [vmem:[#allocation8 + $0xac] ss:$12 sps:$4 sm:$0xff]  }
  0x5d   :  { %2360 = vmatprep.subr.msk.bf16.mxu0 %vm584_vm0, %v2402_v22  ;;  %v2447_v56 = vld [vmem:[#allocation8 + $0x300] ss:$12 sps:$4 sm:$0xff]   ;;  %v2451_v58 = vld [vmem:[#allocation8 + $0x31c] ss:$12 sps:$4 sm:$0xff]   ;;  %v2453_v60 = vld [vmem:[#allocation8 + $0x318] ss:$12 sps:$4 sm:$0xff]  }
  0x5e   :  { %v2448_v59 = vld [vmem:[#allocation8 + $0xa8] ss:$12 sps:$4 sm:$0xff]   ;;  %v2456_v61 = vld [vmem:[#allocation8 + $0xc4] ss:$12 sps:$4 sm:$0xff]   ;;  %v2454_v63 = vld [vmem:[#allocation8 + $0xc0] ss:$12 sps:$4 sm:$0xff]  }
  0x5f   :  { %2055 = vmatmul.mubr.msk.bf16.gmra.mrb[4].mxu0 %vm577_vm1, %v2400_v23  ;;  %605 = vmatpush1.bf16.msra.mxu1 %v2401_v24  ;;  %v2457_v62 = vld [vmem:[#allocation8 + $0x334] ss:$12 sps:$4 sm:$0xff]   ;;  %v2459_v1 = vld [vmem:[#allocation8 + $0x330] ss:$12 sps:$4 sm:$0xff]   ;;  %v2463_v5 = vld [vmem:[#allocation8 + $0xd8] ss:$12 sps:$4 sm:$0xff]  }
  0x60   :  { %2299 = vmatpush3.bf16.msra.mxu0 %v592_v26  ;;  %606 = vmatprep.subr.bf16.mxu1 %v2403_v25  ;;  %v2465_v2 = vld [vmem:[#allocation8 + $0xdc] ss:$12 sps:$4 sm:$0xff]   ;;  %v2866_v4 = vld [vmem:[#allocation5] ss:$12 sps:$4 sm:$0xff]   ;;  %v2874_v17 = vld [vmem:[#allocation5 + $0x18] ss:$12 sps:$4 sm:$0xff]  }
  0x61   :  { %2300 = vmatprep.mubr.msk.bf16.mxu0 %vm577_vm1, %v2391_v15  ;;  %1132 = vmatprep.subr.bf16.mxu0 %v2408_v27  ;;  %v2466_v3 = vld [vmem:[#allocation8 + $0x290] ss:$12 sps:$4 sm:$0xff]   ;;  %v2470_v7 = vld [vmem:[#allocation8 + $0xf4] ss:$12 sps:$4 sm:$0xff]   ;;  %v2475_v12 = vld [vmem:[#allocation8 + $0x10c] ss:$12 sps:$4 sm:$0xff]  }
  0x62   :  { %v2467_v6 = vld [vmem:[#allocation8 + $0x1d0] ss:$12 sps:$4 sm:$0xff]   ;;  %v2471_v8 = vld [vmem:[#allocation8 + $0x2a8] ss:$12 sps:$4 sm:$0xff]   ;;  %v2476_v13 = vld [vmem:[#allocation8 + $0x2c0] ss:$12 sps:$4 sm:$0xff]  }
  0x63   :  { %607 = vmatpush1.bf16.msra.mxu1 %v2405_v28  ;;  %v2468_v9 = vld [vmem:[#allocation8 + $0xf0] ss:$12 sps:$4 sm:$0xff]   ;;  %v2472_v11 = vld [vmem:[#allocation8 + $0x1e8] ss:$12 sps:$4 sm:$0xff]   ;;  %v2477_v16 = vld [vmem:[#allocation8 + $0x200] ss:$12 sps:$4 sm:$0xff]  }
  0x64   :  { %608 = vmatprep.subr.bf16.mxu1 %v2409_v29  ;;  %v2868_v10 = vld [vmem:[#allocation5 + $0x1c] ss:$12 sps:$4 sm:$0xff]   ;;  %v2871_v14 = vld [vmem:[#allocation2 + $0x4] ss:$12 sps:$4 sm:$0xff]   ;;  %v2480_v18 = vld [vmem:[#allocation8 + $0x124] ss:$12 sps:$4 sm:$0xff]  }
  0x65   :  { %v2473_v15 = vld [vmem:[#allocation8 + $0x108] ss:$12 sps:$4 sm:$0xff]   ;;  %v2481_v19 = vld [vmem:[#allocation8 + $0x2d8] ss:$12 sps:$4 sm:$0xff]   ;;  %v2478_v20 = vld [vmem:[#allocation8 + $0x120] ss:$12 sps:$4 sm:$0xff]  }
  0x66   :  { %v2482_v21 = vld [vmem:[#allocation8 + $0x218] ss:$12 sps:$4 sm:$0xff]   ;;  %v2485_v22 = vld [vmem:[#allocation8 + $0x13c] ss:$12 sps:$4 sm:$0xff]   ;;  %v2490_v26 = vld [vmem:[#allocation8 + $0x154] ss:$12 sps:$4 sm:$0xff]  }
  0x67   :  { %2301 = vmatmul.mubr.msk.bf16.vlgmr.msra.gmra.mrb[8].mxu0 %vm577_vm1, %v2400_v23  ;;  %609 = vmatpush1.bf16.msra.mxu1 %v2411_v31  ;;  %v2486_v23 = vld [vmem:[#allocation8 + $0x2f0] ss:$12 sps:$4 sm:$0xff]   ;;  %v2483_v24 = vld [vmem:[#allocation8 + $0x138] ss:$12 sps:$4 sm:$0xff]   ;;  %v2491_v27 = vld [vmem:[#allocation8 + $0x308] ss:$12 sps:$4 sm:$0xff]  }
  0x68   :  { %1133 = vmatpush1.bf16.msra.mxu0 %v2406_v30  ;;  %610 = vmatprep.subr.bf16.mxu1 %v2415_v33  ;;  %v2487_v25 = vld [vmem:[#allocation8 + $0x230] ss:$12 sps:$4 sm:$0xff]   ;;  %v2492_v29 = vld [vmem:[#allocation8 + $0x248] ss:$12 sps:$4 sm:$0xff]   ;;  %v2497_v30 = vld [vmem:[#allocation8 + $0x16c] ss:$12 sps:$4 sm:$0xff]  }
  0x69   :  { %1134 = vmatprep.subr.bf16.mxu0 %v2414_v32  ;;  %1164 = vmatprep.mubr.bf16.mxu0 %v2871_v14  ;;  %v2488_v28 = vld [vmem:[#allocation8 + $0x150] ss:$12 sps:$4 sm:$0xff]   ;;  %v2499_v31 = vld [vmem:[#allocation8 + $0x320] ss:$12 sps:$4 sm:$0xff]   ;;  %v2495_v32 = vld [vmem:[#allocation8 + $0x168] ss:$12 sps:$4 sm:$0xff]  }
  0x6a   :  { %v2500_v33 = vld [vmem:[#allocation8 + $0x260] ss:$12 sps:$4 sm:$0xff]   ;;  %s2711_s17 = scalar_lea.vmem %s1980_s1, 256 }
  0x6b   :  { %611 = vmatpush1.bf16.msra.mxu1 %v2417_v35  ;;  %v2507_v35 = vld [vmem:[#allocation8 + $0x338] ss:$12 sps:$4 sm:$0xff]   ;;  %p2712_p4 = scmp.ne.s32.totalorder %s1980_s1, %s2711_s17  ;;  %p2717_p6 = scmp.lt.s32.totalorder %s2711_s17, %s2711_s17 }
  0x6c   :  { %1135 = vmatpush1.bf16.msra.mxu0 %v2412_v34  ;;  %612 = vmatprep.subr.bf16.mxu1 %v2421_v37  ;;  %v2506_v34 = vld [vmem:[#allocation8 + $0x184] ss:$12 sps:$4 sm:$0xff]   ;;  %v2504_v37 = vld [vmem:[#allocation8 + $0x180] ss:$12 sps:$4 sm:$0xff]  }
  0x6d   :  { %1136 = vmatprep.subr.bf16.mxu0 %v2420_v36  ;;  %v2879_v36 = vld [vmem:[#allocation2] ss:$12 sps:$4 sm:$0xff]   ;;  %p2718_p7 = por %p2717_p6, %p2716_p5 }
  0x6f   :  { %613 = vmatpush1.bf16.msra.mxu1 %v2423_v39  ;;  %v2509_v39 = vld [vmem:[#allocation8 + $0xc8] ss:$12 sps:$4 sm:$0xff]   ;;  %p2719_p8 = pnand %p2718_p7, %p2712_p4 }
  0x70   :  { %1137 = vmatpush1.bf16.msra.mxu0 %v2418_v38  ;;  %614 = vmatprep.subr.bf16.mxu1 %v2427_v41  ;;  %v2508_v38 = vld [vmem:[#allocation8 + $0x278] ss:$12 sps:$4 sm:$0xff]  }
  0x71   :  { %1138 = vmatprep.subr.bf16.mxu0 %v2426_v40  ;;  %v2512_v40 = vld [vmem:[#allocation8 + $0x19c] ss:$12 sps:$4 sm:$0xff]   ;;  %v2510_v41 = vld [vmem:[#allocation8 + $0x198] ss:$12 sps:$4 sm:$0xff]  }
  0x73   :  { %615 = vmatpush1.bf16.msra.mxu1 %v2429_v43  ;;  %v2513_v43 = vld [vmem:[#allocation8 + $0x8] ss:$12 sps:$4 sm:$0xff]  }
  0x74   :  { %1139 = vmatpush1.bf16.msra.mxu0 %v2424_v42  ;;  %616 = vmatprep.subr.bf16.mxu1 %v2433_v45  ;;  %v2881_v42 = vld [vmem:[#allocation2 + $0x1c] ss:$12 sps:$4 sm:$0xff]  }
  0x75   :  { %1140 = vmatprep.subr.bf16.mxu0 %v2432_v44  ;;  %v2519_v44 = vld [vmem:[#allocation8 + $0x1b4] ss:$12 sps:$4 sm:$0x3f]  }
  0x76   :  { %v2517_v45 = vld [vmem:[#allocation8 + $0xe0] ss:$12 sps:$4 sm:$0xff]  }
  0x77   :  { %617 = vmatpush1.bf16.msra.mxu1 %v2435_v48  ;;  %v2518_v48 = vld [vmem:[#allocation8 + $0x20] ss:$12 sps:$4 sm:$0xff]  }
  0x78   :  { %1141 = vmatpush1.bf16.msra.mxu0 %v2430_v46  ;;  %618 = vmatprep.subr.bf16.mxu1 %v2439_v50  ;;  %v2521_v46 = vld [vmem:[#allocation8 + $0x1b0] ss:$12 sps:$4 sm:$0x3f]   ;;  %v2522_v50 = vld [vmem:[#allocation8 + $0xf8] ss:$12 sps:$4 sm:$0xff]  }
  0x79   :  { %1142 = vmatprep.subr.bf16.mxu0 %v2438_v49  ;;  %v1124_v49 = vsel %vm584_vm0, %v2521_v46, 0  ;;  %v2591_v46 = vld [vmem:[#allocation8 + $0x4e0] ss:$12 sps:$4 sm:$0xff]  }
  0x7b   :  { %619 = vmatpush1.bf16.msra.mxu1 %v2441_v52  ;;  %v2523_v52 = vld [vmem:[#allocation8 + $0x38] ss:$12 sps:$4 sm:$0xff]  }
  0x7c   :  { %1143 = vmatpush1.bf16.msra.mxu0 %v2436_v51  ;;  %620 = vmatprep.subr.bf16.mxu1 %v2445_v54  ;;  %v2526_v51 = vld [vmem:[#allocation8 + $0x394] ss:$12 sps:$4 sm:$0xff]   ;;  %v2524_v54 = vld [vmem:[#allocation8 + $0x390] ss:$12 sps:$4 sm:$0xff]  }
  0x7d   :  { %1144 = vmatprep.subr.bf16.mxu0 %v2444_v53  ;;  %v2528_v53 = vld [vmem:[#allocation8 + $0x110] ss:$12 sps:$4 sm:$0xff]  }
  0x7f   :  { %621 = vmatpush1.bf16.msra.mxu1 %v2447_v56  ;;  %v2529_v56 = vld [vmem:[#allocation8 + $0x50] ss:$12 sps:$4 sm:$0xff]  }
  0x80   :  { %1145 = vmatpush1.bf16.msra.mxu0 %v2442_v55  ;;  %622 = vmatprep.subr.bf16.mxu1 %v2451_v58  ;;  %v2894_v55 = vld [vmem:[#allocation2 + $0x8] ss:$12 sps:$4 sm:$0xff]   ;;  %v2533_v58 = vld [vmem:[#allocation8 + $0x128] ss:$12 sps:$4 sm:$0xff]  }
  0x81   :  { %1146 = vmatprep.subr.bf16.mxu0 %v2450_v57  ;;  %v2532_v57 = vld [vmem:[#allocation8 + $0x3ac] ss:$12 sps:$4 sm:$0xff]  }
  0x83   :  { %623 = vmatpush1.bf16.msra.mxu1 %v2453_v60  ;;  %v2534_v60 = vld [vmem:[#allocation8 + $0x68] ss:$12 sps:$4 sm:$0xff]  }
  0x84   :  { %1147 = vmatpush1.bf16.msra.mxu0 %v2448_v59  ;;  %624 = vmatprep.subr.bf16.mxu1 %v2457_v62  ;;  %v2530_v59 = vld [vmem:[#allocation8 + $0x3a8] ss:$12 sps:$4 sm:$0xff]   ;;  %v2538_v62 = vld [vmem:[#allocation8 + $0x140] ss:$12 sps:$4 sm:$0xff]  }
  0x85   :  { %1148 = vmatprep.subr.bf16.mxu0 %v2456_v61  ;;  %v2537_v61 = vld [vmem:[#allocation8 + $0x3c4] ss:$12 sps:$4 sm:$0xff]  }
  0x87   :  { %625 = vmatpush1.bf16.msra.mxu1 %v2459_v1  ;;  %v2539_v1 = vld [vmem:[#allocation8 + $0x80] ss:$12 sps:$4 sm:$0xff]  }
  0x88   :  { %1149 = vmatpush1.bf16.msra.mxu0 %v2454_v63  ;;  %2195 = vmatprep.subr.bf16.mxu1 %v2466_v3  ;;  %v2535_v63 = vld [vmem:[#allocation8 + $0x3c0] ss:$12 sps:$4 sm:$0xff]   ;;  %v2543_v3 = vld [vmem:[#allocation8 + $0x158] ss:$12 sps:$4 sm:$0xff]  }
  0x89   :  { %1150 = vmatprep.subr.bf16.mxu0 %v2465_v2  ;;  %v2542_v2 = vld [vmem:[#allocation8 + $0x3dc] ss:$12 sps:$4 sm:$0xff]  }
  0x8a   :  { %627 = vmatmul.mubr.bf16.vlgmr.msra.gmra.mrb[0].mxu1 %v2866_v4 }
  0x8b   :  { %2196 = vmatpush3.bf16.msra.mxu1 %v2467_v6  ;;  %635 = vmatprep.mubr.bf16.mxu1 %v2868_v10  ;;  %v2544_v6 = vld [vmem:[#allocation8 + $0x98] ss:$12 sps:$4 sm:$0xff]  }
  0x8c   :  { %1151 = vmatpush1.bf16.msra.mxu0 %v2463_v5  ;;  %2197 = vmatprep.subr.bf16.mxu1 %v2471_v8  ;;  %v2540_v5 = vld [vmem:[#allocation8 + $0x3d8] ss:$12 sps:$4 sm:$0xff]   ;;  %v2548_v8 = vld [vmem:[#allocation8 + $0x170] ss:$12 sps:$4 sm:$0xff]  }
  0x8d   :  { %1152 = vmatprep.subr.bf16.mxu0 %v2470_v7  ;;  %v2547_v7 = vld [vmem:[#allocation8 + $0x3f4] ss:$12 sps:$4 sm:$0xff]  }
  0x8f   :  { %2198 = vmatpush3.bf16.msra.mxu1 %v2472_v11  ;;  %v2552_v11 = vld [vmem:[#allocation8 + $0x40c] ss:$12 sps:$4 sm:$0xff]  }
  0x90   :  { %1153 = vmatpush1.bf16.msra.mxu0 %v2468_v9  ;;  %2199 = vmatprep.subr.bf16.mxu1 %v2476_v13  ;;  %v2545_v9 = vld [vmem:[#allocation8 + $0x3f0] ss:$12 sps:$4 sm:$0xff]   ;;  %v2550_v13 = vld [vmem:[#allocation8 + $0x408] ss:$12 sps:$4 sm:$0xff]  }
  0x91   :  { %1154 = vmatprep.subr.bf16.mxu0 %v2475_v12  ;;  %v2553_v12 = vld [vmem:[#allocation8 + $0x188] ss:$12 sps:$4 sm:$0xff]  }
  0x92   :  { %636 = vmatmul.mubr.bf16.gmra.mrb[4].mxu1 %v2874_v17 }
  0x93   :  { %2200 = vmatpush3.bf16.msra.mxu1 %v2477_v16  ;;  %724 = vmatprep.mubr.bf16.mxu1 %v2863_v47  ;;  %v2886_v47 = vld [vmem:[#allocation2 + $0x18] ss:$12 sps:$4 sm:$0xff]   ;;  %v2554_v16 = vld [vmem:[#allocation8 + $0x420] ss:$12 sps:$4 sm:$0xff]  }
  0x94   :  { %1155 = vmatpush1.bf16.msra.mxu0 %v2473_v15  ;;  %2201 = vmatprep.subr.bf16.mxu1 %v2481_v19  ;;  %v2560_v15 = vld [vmem:[#allocation8 + $0x1a0] ss:$12 sps:$4 sm:$0xff]  }
  0x95   :  { %1156 = vmatprep.subr.bf16.mxu0 %v2480_v18  ;;  %v2564_v18 = vld [vmem:[#allocation8 + $0x1b8] ss:$12 sps:$4 sm:$0x3f]   ;;  %v2603_v19 = vld [vmem:[#allocation7 + $0x4] ss:$12 sps:$4 sm:$0xff]  }
  0x97   :  { %2202 = vmatpush3.bf16.msra.mxu1 %v2482_v21  ;;  %v2563_v21 = vld [vmem:[#allocation8 + $0x454] ss:$12 sps:$4 sm:$0xff]  }
  0x98   :  { %1157 = vmatpush1.bf16.msra.mxu0 %v2478_v20  ;;  %2203 = vmatprep.subr.bf16.mxu1 %v2486_v23  ;;  %v2557_v20 = vld [vmem:[#allocation8 + $0x438] ss:$12 sps:$4 sm:$0xff]  }
  0x99   :  { %1158 = vmatprep.subr.bf16.mxu0 %v2485_v22  ;;  %v1130_v22 = vsel %vm584_vm0, %v2564_v18, 0  ;;  %v2568_v23 = vld [vmem:[#allocation8 + $0x458] ss:$12 sps:$4 sm:$0xff]  }
  0x9b   :  { %2204 = vmatpush3.bf16.msra.mxu1 %v2487_v25  ;;  %v2567_v25 = vld [vmem:[#allocation8 + $0x46c] ss:$12 sps:$4 sm:$0xff]  }
  0x9c   :  { %1159 = vmatpush1.bf16.msra.mxu0 %v2483_v24  ;;  %2205 = vmatprep.subr.bf16.mxu1 %v2491_v27  ;;  %v2561_v24 = vld [vmem:[#allocation8 + $0x450] ss:$12 sps:$4 sm:$0xff]   ;;  %v2570_v27 = vld [vmem:[#allocation8 + $0x398] ss:$12 sps:$4 sm:$0xff]  }
  0x9d   :  { %1160 = vmatprep.subr.bf16.mxu0 %v2490_v26  ;;  %v2565_v26 = vld [vmem:[#allocation8 + $0x468] ss:$12 sps:$4 sm:$0xff]  }
  0x9f   :  { %2206 = vmatpush3.bf16.msra.mxu1 %v2492_v29  ;;  %v2574_v29 = vld [vmem:[#allocation8 + $0x470] ss:$12 sps:$4 sm:$0xff]  }
  0xa0   :  { %1161 = vmatpush1.bf16.msra.mxu0 %v2488_v28  ;;  %2207 = vmatprep.subr.bf16.mxu1 %v2499_v31  ;;  %v2573_v28 = vld [vmem:[#allocation8 + $0x484] ss:$12 sps:$4 sm:$0xff]  }
  0xa1   :  { %1162 = vmatprep.subr.bf16.mxu0 %v2497_v30  ;;  %v2571_v30 = vld [vmem:[#allocation8 + $0x480] ss:$12 sps:$4 sm:$0xff]   ;;  %v2575_v31 = vld [vmem:[#allocation8 + $0x3b0] ss:$12 sps:$4 sm:$0xff]  }
  0xa3   :  { %2208 = vmatpush3.bf16.msra.mxu1 %v2500_v33  ;;  %v2579_v33 = vld [vmem:[#allocation8 + $0x488] ss:$12 sps:$4 sm:$0xff]  }
  0xa4   :  { %1163 = vmatpush1.bf16.msra.mxu0 %v2495_v32  ;;  %2209 = vmatprep.subr.bf16.mxu1 %v2507_v35  ;;  %v2578_v32 = vld [vmem:[#allocation8 + $0x49c] ss:$12 sps:$4 sm:$0xff]  }
  0xa5   :  { %1181 = vmatprep.subr.bf16.mxu0 %v2506_v34  ;;  %v2576_v34 = vld [vmem:[#allocation8 + $0x498] ss:$12 sps:$4 sm:$0xff]   ;;  %v2580_v35 = vld [vmem:[#allocation8 + $0x3c8] ss:$12 sps:$4 sm:$0xff]  }
  0xa7   :  { %1165 = vmatmul.mubr.bf16.vlgmr.msra.gmra.mrb[0].mxu0 %v2879_v36  ;;  %2210 = vmatpush3.bf16.msra.mxu1 %v2508_v38  ;;  %v2581_v38 = vld [vmem:[#allocation8 + $0x4b0] ss:$12 sps:$4 sm:$0xff]  }
  0xa8   :  { %1182 = vmatpush1.bf16.msra.mxu0 %v2504_v37  ;;  %2228 = vmatprep.subr.bf16.mxu1 %v2509_v39  ;;  %v2584_v37 = vld [vmem:[#allocation8 + $0x4a0] ss:$12 sps:$4 sm:$0xff]  }
  0xa9   :  { %1183 = vmatprep.subr.bf16.mxu0 %v2512_v40  ;;  %1173 = vmatprep.mubr.bf16.mxu0 %v2881_v42  ;;  %v2585_v39 = vld [vmem:[#allocation8 + $0x3e0] ss:$12 sps:$4 sm:$0xff]  }
  0xaa   :  { %725 = vmatmul.mubr.bf16.vlgmr.msra.gmra.mrb[8].mxu1 %v2866_v4  ;;  %v2569_v4 = vld [vmem:[#allocation2 + $0x20] ss:$12 sps:$4 sm:$0xff]   ;;  %v2588_v40 = vld [vmem:[#allocation8 + $0x4cc] ss:$12 sps:$4 sm:$0xff]  }
  0xab   :  { %2229 = vmatpush3.bf16.msra.mxu1 %v2513_v43  ;;  %730 = vmatprep.mubr.bf16.mxu1 %v2868_v10  ;;  %v2549_v10 = vld [vmem:[#allocation8 + $0xb0] ss:$12 sps:$4 sm:$0xff]   ;;  %v2590_v43 = vld [vmem:[#allocation8 + $0x3f8] ss:$12 sps:$4 sm:$0xff]  }
  0xac   :  { %1184 = vmatpush1.bf16.msra.mxu0 %v2510_v41  ;;  %2230 = vmatprep.subr.bf16.mxu1 %v2517_v45  ;;  %v2589_v41 = vld [vmem:[#allocation8 + $0x4b8] ss:$12 sps:$4 sm:$0xff]   ;;  %v2594_v45 = vld [vmem:[#allocation8 + $0x4d0] ss:$12 sps:$4 sm:$0xff]  }
  0xad   :  { %2121 = vmatprep.subr.msk.bf16.mxu0 %vm584_vm0, %v2519_v44  ;;  %v2593_v44 = vld [vmem:[#allocation8 + $0x4e4] ss:$12 sps:$4 sm:$0xff]  }
  0xaf   :  { %1174 = vmatmul.mubr.bf16.gmra.mrb[4].mxu0 %v2886_v47  ;;  %2231 = vmatpush3.bf16.msra.mxu1 %v2518_v48  ;;  %v2598_v48 = vld [vmem:[#allocation8 + $0x4fc] ss:$12 sps:$4 sm:$0xff]  }
  0xb0   :  { %1186 = vmatpush1.bf16.msra.mxu0 %v1124_v49  ;;  %2232 = vmatprep.subr.bf16.mxu1 %v2522_v50  ;;  %v2599_v49 = vld [vmem:[#allocation8 + $0x4e8] ss:$12 sps:$4 sm:$0xff]   ;;  %v2596_v50 = vld [vmem:[#allocation8 + $0x4f8] ss:$12 sps:$4 sm:$0xff]  }
  0xb1   :  { %1213 = vmatprep.mubr.bf16.mxu0 %v2747_v0  ;;  %1755 = vmatprep.subr.bf16.mxu0 %v2526_v51  ;;  %v2600_v51 = vld [vmem:[#allocation8 + $0x428] ss:$12 sps:$4 sm:$0xff]  }
  0xb2   :  { %731 = vmatmul.mubr.bf16.gmra.mrb[12].mxu1 %v2874_v17  ;;  %v2559_v17 = vld [vmem:[#allocation8 + $0x43c] ss:$12 sps:$4 sm:$0xff]  }
  0xb3   :  { %2233 = vmatpush3.bf16.msra.mxu1 %v2523_v52  ;;  %1262 = vmatprep.mubr.bf16.mxu1 %v2871_v14  ;;  %v2556_v14 = vld [vmem:[#allocation8 + $0x424] ss:$12 sps:$4 sm:$0xff]   ;;  %v2606_v52 = vld [vmem:[#allocation8 + $0x514] ss:$12 sps:$4 sm:$0xff]  }
  0xb4   :  { %2234 = vmatprep.subr.bf16.mxu1 %v2528_v53  ;;  %v2607_v53 = vld [vmem:[#allocation8 + $0x500] ss:$12 sps:$4 sm:$0xff]  }
  0xb7   :  { %2122 = vmatmul.mubr.msk.bf16.vlgmr.msra.gmra.mrb[0].mxu0 %vm577_vm1, %v2894_v55  ;;  %2235 = vmatpush3.bf16.msra.mxu1 %v2529_v56  ;;  %v2608_v56 = vld [vmem:[#allocation8 + $0x440] ss:$12 sps:$4 sm:$0xff]  }
  0xb8   :  { %1756 = vmatpush1.bf16.msra.mxu0 %v2524_v54  ;;  %2236 = vmatprep.subr.bf16.mxu1 %v2533_v58  ;;  %v2601_v54 = vld [vmem:[#allocation7] ss:$12 sps:$4 sm:$0xff]   ;;  %v2612_v58 = vld [vmem:[#allocation7 + $0x1c] ss:$12 sps:$4 sm:$0xff]  }
  0xb9   :  { %1757 = vmatprep.subr.bf16.mxu0 %v2532_v57  ;;  %1222 = vmatprep.mubr.bf16.mxu0 %v2747_v0  ;;  %v2611_v57 = vld [vmem:[#allocation8 + $0x52c] ss:$12 sps:$4 sm:$0xff]  }
  0xbb   :  { %2237 = vmatpush3.bf16.msra.mxu1 %v2534_v60  ;;  %v2609_v60 = vld [vmem:[#allocation8 + $0x528] ss:$12 sps:$4 sm:$0xff]  }
  0xbc   :  { %1758 = vmatpush1.bf16.msra.mxu0 %v2530_v59  ;;  %2238 = vmatprep.subr.bf16.mxu1 %v2538_v62  ;;  %v2614_v59 = vld [vmem:[#allocation8 + $0x518] ss:$12 sps:$4 sm:$0xff]   ;;  %v2618_v62 = vld [vmem:[#allocation8 + $0x540] ss:$12 sps:$4 sm:$0x3f]  }
  0xbd   :  { %1759 = vmatprep.subr.bf16.mxu0 %v2537_v61  ;;  %v2616_v61 = vld [vmem:[#allocation8 + $0x544] ss:$12 sps:$4 sm:$0x3f]  }
  0xbf   :  { %2123 = vmatmul.mubr.msk.bf16.gmra.mrb[4].mxu0 %vm577_vm1, %v2569_v4  ;;  %2239 = vmatpush3.bf16.msra.mxu1 %v2539_v1  ;;  %v2615_v1 = vld [vmem:[#allocation7 + $0x18] ss:$12 sps:$4 sm:$0xff]  }
  0xc0   :  { %1760 = vmatpush1.bf16.msra.mxu0 %v2535_v63  ;;  %2240 = vmatprep.subr.bf16.mxu1 %v2543_v3  ;;  %v2619_v63 = vld [vmem:[#allocation8 + $0x530] ss:$12 sps:$4 sm:$0xff]   ;;  %v2621_v3 = vld [vmem:[#allocation8 + $0x548] ss:$12 sps:$4 sm:$0x3f]  }
  0xc1   :  { %1761 = vmatprep.subr.bf16.mxu0 %v2542_v2  ;;  %1787 = vmatprep.mubr.bf16.mxu0 %v2603_v19  ;;  %v1747_v2 = vsel %vm584_vm0, %v2618_v62, 0 }
  0xc3   :  { %2241 = vmatpush3.bf16.msra.mxu1 %v2544_v6  ;;  %v2622_v6 = vld [vmem:[#allocation7 + $0x20] ss:$12 sps:$4 sm:$0xff]  }
  0xc4   :  { %1762 = vmatpush1.bf16.msra.mxu0 %v2540_v5  ;;  %2242 = vmatprep.subr.bf16.mxu1 %v2548_v8  ;;  %v2620_v5 = vld [vmem:[#allocation7 + $0x8] ss:$12 sps:$4 sm:$0xff]  }
  0xc5   :  { %1763 = vmatprep.subr.bf16.mxu0 %v2547_v7 }
  0xc7   :  { %2243 = vmatpush3.bf16.msra.mxu1 %v2549_v10 }
  0xc8   :  { %1764 = vmatpush1.bf16.msra.mxu0 %v2545_v9  ;;  %2304 = vmatprep.subr.bf16.mxu1 %v2553_v12 }
  0xc9   :  { %1765 = vmatprep.subr.bf16.mxu0 %v2552_v11 }
  0xca   :  { %1263 = vmatmul.mubr.bf16.vlgmr.msra.gmra.mrb[16].mxu1 %v2879_v36  ;;  %v2583_v36 = vld [vmem:[#allocation8 + $0x4b4] ss:$12 sps:$4 sm:$0xff]  }
  0xcb   :  { %2305 = vmatpush3.bf16.msra.mxu1 %v2553_v12  ;;  %1268 = vmatprep.mubr.bf16.mxu1 %v2881_v42  ;;  %v2586_v42 = vld [vmem:[#allocation8 + $0x4c8] ss:$12 sps:$4 sm:$0xff]  }
  0xcc   :  { %1766 = vmatpush1.bf16.msra.mxu0 %v2550_v13  ;;  %2306 = vmatprep.subr.bf16.mxu1 %v2560_v15 }
  0xcd   :  { %1767 = vmatprep.subr.bf16.mxu0 %v2556_v14 }
  0xcf   :  { %2307 = vmatpush3.bf16.msra.mxu1 %v2560_v15 }
  0xd0   :  { %1768 = vmatpush1.bf16.msra.mxu0 %v2554_v16  ;;  %2361 = vmatprep.subr.msk.bf16.mxu1 %vm584_vm0, %v2564_v18 }
  0xd1   :  { %1769 = vmatprep.subr.bf16.mxu0 %v2559_v17 }
  0xd2   :  { %1269 = vmatmul.mubr.bf16.gmra.mrb[20].mxu1 %v2886_v47  ;;  %v2595_v47 = vld [vmem:[#allocation8 + $0x410] ss:$12 sps:$4 sm:$0xff]  }
  0xd3   :  { %2309 = vmatpush3.bf16.msra.mxu1 %v1130_v22  ;;  %2310 = vmatprep.mubr.msk.bf16.mxu1 %vm577_vm1, %v2894_v55  ;;  %v2604_v55 = vld [vmem:[#allocation8 + $0x510] ss:$12 sps:$4 sm:$0xff]  }
  0xd4   :  { %1770 = vmatpush1.bf16.msra.mxu0 %v2557_v20  ;;  %2261 = vmatprep.subr.bf16.mxu1 %v2568_v23 }
  0xd5   :  { %1771 = vmatprep.subr.bf16.mxu0 %v2563_v21 }
  0xd8   :  { %1772 = vmatpush1.bf16.msra.mxu0 %v2561_v24 }
  0xd9   :  { %1773 = vmatprep.subr.bf16.mxu0 %v2567_v25 }
  0xda   :  { %2311 = vmatmul.mubr.msk.bf16.vlgmr.msra.gmra.mrb[24].mxu1 %vm577_vm1, %v2569_v4  ;;  %v1753_v4 = vsel %vm584_vm0, %v2621_v3, 0 }
  0xdb   :  { %2262 = vmatpush3.bf16.msra.mxu1 %v2570_v27  ;;  %1885 = vmatprep.mubr.bf16.mxu1 %v2603_v19 }
  0xdc   :  { %1774 = vmatpush1.bf16.msra.mxu0 %v2565_v26  ;;  %2263 = vmatprep.subr.bf16.mxu1 %v2574_v29 }
  0xdd   :  { %1775 = vmatprep.subr.bf16.mxu0 %v2573_v28 }
  0xdf   :  { %2264 = vmatpush3.bf16.msra.mxu1 %v2575_v31 }
  0xe0   :  { %1776 = vmatpush1.bf16.msra.mxu0 %v2571_v30  ;;  %2265 = vmatprep.subr.bf16.mxu1 %v2579_v33 }
  0xe1   :  { %1777 = vmatprep.subr.bf16.mxu0 %v2578_v32 }
  0xe3   :  { %2266 = vmatpush3.bf16.msra.mxu1 %v2580_v35 }
  0xe4   :  { %1778 = vmatpush1.bf16.msra.mxu0 %v2576_v34  ;;  %2267 = vmatprep.subr.bf16.mxu1 %v2584_v37 }
  0xe5   :  { %1779 = vmatprep.subr.bf16.mxu0 %v2583_v36 }
  0xe7   :  { %2268 = vmatpush3.bf16.msra.mxu1 %v2585_v39 }
  0xe8   :  { %1780 = vmatpush1.bf16.msra.mxu0 %v2581_v38  ;;  %2269 = vmatprep.subr.bf16.mxu1 %v2589_v41 }
  0xe9   :  { %1781 = vmatprep.subr.bf16.mxu0 %v2588_v40 }
  0xeb   :  { %2270 = vmatpush3.bf16.msra.mxu1 %v2590_v43 }
  0xec   :  { %1782 = vmatpush1.bf16.msra.mxu0 %v2586_v42  ;;  %2271 = vmatprep.subr.bf16.mxu1 %v2594_v45 }
  0xed   :  { %1783 = vmatprep.subr.bf16.mxu0 %v2593_v44 }
  0xef   :  { %2272 = vmatpush3.bf16.msra.mxu1 %v2595_v47 }
  0xf0   :  { %1784 = vmatpush1.bf16.msra.mxu0 %v2591_v46  ;;  %2273 = vmatprep.subr.bf16.mxu1 %v2599_v49 }
  0xf1   :  { %1785 = vmatprep.subr.bf16.mxu0 %v2598_v48 }
  0xf3   :  { %2274 = vmatpush3.bf16.msra.mxu1 %v2600_v51 }
  0xf4   :  { %1786 = vmatpush1.bf16.msra.mxu0 %v2596_v50  ;;  %2275 = vmatprep.subr.bf16.mxu1 %v2607_v53 }
  0xf5   :  { %1804 = vmatprep.subr.bf16.mxu0 %v2606_v52 }
  0xf7   :  { %1788 = vmatmul.mubr.bf16.vlgmr.msra.gmra.mrb[0].mxu0 %v2601_v54  ;;  %2276 = vmatpush3.bf16.msra.mxu1 %v2608_v56 }
  0xf8   :  { %1805 = vmatpush1.bf16.msra.mxu0 %v2604_v55  ;;  %1796 = vmatprep.mubr.bf16.mxu0 %v2612_v58 }
  0xf9   :  { %1806 = vmatprep.subr.bf16.mxu0 %v2611_v57  ;;  %2314 = vmatprep.subr.bf16.mxu1 %v2614_v59 }
  0xfa   :  { %1886 = vmatmul.mubr.bf16.vlgmr.msra.gmra.mrb[28].mxu1 %v2601_v54 }
  0xfb   :  { %2315 = vmatpush3.bf16.msra.mxu1 %v2614_v59  ;;  %1891 = vmatprep.mubr.bf16.mxu1 %v2612_v58 }
  0xfc   :  { %1807 = vmatpush1.bf16.msra.mxu0 %v2609_v60  ;;  %2316 = vmatprep.subr.bf16.mxu1 %v2619_v63 }
  0xfd   :  { %2189 = vmatprep.subr.msk.bf16.mxu0 %vm584_vm0, %v2616_v61 }
  0xff   :  { %1797 = vmatmul.mubr.bf16.gmra.mrb[4].mxu0 %v2615_v1  ;;  %2317 = vmatpush3.bf16.msra.mxu1 %v2619_v63 }
 0x100   :  { %1809 = vmatpush1.bf16.msra.mxu0 %v1747_v2  ;;  %1836 = vmatprep.mubr.bf16.mxu0 %v2747_v0 }
 0x101   :  { %2362 = vmatprep.subr.msk.bf16.mxu1 %vm584_vm0, %v2621_v3 }
 0x102   :  { %1892 = vmatmul.mubr.bf16.gmra.mrb[32].mxu1 %v2615_v1 }
 0x103   :  { %2319 = vmatpush3.bf16.msra.mxu1 %v1753_v4  ;;  %2320 = vmatprep.mubr.msk.bf16.mxu1 %vm577_vm1, %v2620_v5 }
 0x107   :  { %2190 = vmatmul.mubr.msk.bf16.vlgmr.msra.gmra.mrb[0].mxu0 %vm577_vm1, %v2620_v5 }
 0x108   :  { %1845 = vmatprep.mubr.bf16.mxu0 %v2747_v0 }
 0x10a   :  { %2321 = vmatmul.mubr.msk.bf16.vlgmr.msra.gmra.mrb[36].mxu1 %vm577_vm1, %v2622_v6 }
 0x10f   :  { %2191 = vmatmul.mubr.msk.bf16.gmra.mrb[4].mxu0 %vm577_vm1, %v2622_v6 }
 0x13a   :  { %v2302_v7 = vpop.f32.mrb[8].mxu0 }
 0x13b   :  { %v773_v8 = vpop.f32.mrb[9].mxu0 }
 0x13c   :  { %v2303_v9 = vpop.f32.mrb[10].mxu0 }
 0x13d   :  { %v775_v10 = vpop.f32.mrb[11].mxu0 }
 0x15d   :  { %v628_v11 = vpop.f32.mrb[0].mxu1 }
 0x15e   :  { %v630_v12 = vpop.f32.mrb[1].mxu1 }
 0x15f   :  { %v631_v13 = vpop.f32.mrb[2].mxu1 }
 0x160   :  { %v633_v14 = vpop.f32.mrb[3].mxu1 }
 0x165   :  { %v637_v15 = vpop.f32.mrb[4].mxu1 }
 0x166   :  { %v638_v16 = vpop.f32.mrb[5].mxu1 }
 0x167   :  { %v640_v17 = vpop.f32.mrb[6].mxu1 }
 0x168   :  { %v641_v18 = vpop.f32.mrb[7].mxu1 }
 0x17d   :  { %v2211_v19 = vpop.f32.mrb[8].mxu1 }
 0x17e   :  { %v2212_v20 = vpop.f32.mrb[9].mxu1 }
 0x17f   :  { %v2214_v21 = vpop.f32.mrb[10].mxu1 }
 0x180   :  { %v2215_v0 = vpop.f32.mrb[11].mxu1 }
 0x185   :  { %v2217_v22 = vpop.f32.mrb[12].mxu1 }
 0x186   :  { %v2218_v23 = vpop.f32.mrb[13].mxu1 }
 0x187   :  { %v2219_v24 = vadd.f32 %v2218_v23, %v2217_v22  ;;  %v2220_v25 = vpop.f32.mrb[14].mxu1 }
 0x188   :  { %v2221_v26 = vpop.f32.mrb[15].mxu1 }
 0x189   :  { %v780_v27 = vadd.f32 %v2302_v7, %v2219_v24  ;;  %v2222_v28 = vadd.f32 %v2221_v26, %v2220_v25 }
 0x18b   :  { %v783_v29 = vadd.f32 %v2303_v9, %v2222_v28 }
 0x19d   :  { %v2244_v30 = vpop.f32.mrb[16].mxu1 }
 0x19e   :  { %v2245_v31 = vpop.f32.mrb[17].mxu1 }
 0x19f   :  { %v2247_v32 = vpop.f32.mrb[18].mxu1 }
 0x1a0   :  { %v2248_v33 = vpop.f32.mrb[19].mxu1 }
 0x1a5   :  { %v2250_v34 = vpop.f32.mrb[20].mxu1 }
 0x1a6   :  { %v2251_v35 = vpop.f32.mrb[21].mxu1 }
 0x1a7   :  { %v2252_v36 = vadd.f32 %v2251_v35, %v2250_v34  ;;  %v2253_v37 = vpop.f32.mrb[22].mxu1 }
 0x1a8   :  { %v2254_v38 = vpop.f32.mrb[23].mxu1 }
 0x1a9   :  { %v2255_v39 = vadd.f32 %v2254_v38, %v2253_v37  ;;  %v1271_v40 = vadd.f32 %v2252_v36, %v780_v27 }
 0x1ab   :  { %v1274_v41 = vadd.f32 %v2255_v39, %v783_v29 }
 0x1ad   :  { %v2312_v42 = vpop.f32.mrb[24].mxu1 }
 0x1ae   :  { %v1318_v43 = vadd.f32 %v2312_v42, %v1271_v40  ;;  %v1311_v44 = vpop.f32.mrb[25].mxu1 }
 0x1af   :  { %v2313_v45 = vpop.f32.mrb[26].mxu1 }
 0x1b0   :  { %v1321_v46 = vadd.f32 %v2313_v45, %v1274_v41  ;;  %v1313_v47 = vpop.f32.mrb[27].mxu1 }
 0x1cd   :  { %v2277_v48 = vpop.f32.mrb[28].mxu1 }
 0x1ce   :  { %v2278_v49 = vpop.f32.mrb[29].mxu1 }
 0x1cf   :  { %v2280_v50 = vpop.f32.mrb[30].mxu1 }
 0x1d0   :  { %v2281_v51 = vpop.f32.mrb[31].mxu1 }
 0x1d5   :  { %v2283_v52 = vpop.f32.mrb[32].mxu1 }
 0x1d6   :  { %v2284_v53 = vpop.f32.mrb[33].mxu1 }
 0x1d7   :  { %v2285_v54 = vadd.f32 %v2284_v53, %v2283_v52  ;;  %v2286_v55 = vpop.f32.mrb[34].mxu1 }
 0x1d8   :  { %v2287_v56 = vpop.f32.mrb[35].mxu1 }
 0x1d9   :  { %v2288_v58 = vadd.f32 %v2287_v56, %v2286_v55 }
 0x1da   :  { %v1838_v57 = vpop.f32.mrb[0].mxu0 }
 0x1db   :  { %v2324_v59 = vadd.f32 %v1838_v57, %v628_v11  ;;  %v1840_v60 = vpop.f32.mrb[1].mxu0  ;;  %v2194_v11 = vld [vmem:[%s2938_s4] ss:$0 sm:$0xff] }
 0x1dc   :  { %v1841_v61 = vpop.f32.mrb[2].mxu0 }
 0x1dd   :  { %v2325_v62 = vadd.f32 %v1841_v61, %v631_v13  ;;  %v1843_v63 = vpop.f32.mrb[3].mxu0  ;;  %v2322_v2 = vpop.f32.mrb[36].mxu1 }
 0x1de   :  { %v2326_v1 = vadd.f32 %v1843_v63, %v633_v14  ;;  %v1941_v3 = vadd.f32 %v2322_v2, %v2285_v54  ;;  %v1934_v4 = vpop.f32.mrb[37].mxu1 }
 0x1df   :  { %v2323_v6 = vpop.f32.mrb[38].mxu1 }
 0x1e0   :  { %v1953_v5 = vadd.f32 %v2326_v1, %v2324_v59  ;;  %v1951_v7 = vadd.f32 %v1941_v3, %v1318_v43  ;;  %v1944_v8 = vadd.f32 %v2323_v6, %v2288_v58  ;;  %v1936_v9 = vpop.f32.mrb[39].mxu1 }
 0x1e2   :  { %v1847_v10 = vpop.f32.mrb[4].mxu0  ;;  %v1955_v12 = vadd.f32 %v1953_v5, %v1951_v7  ;;  %v1952_v15 = vadd.f32 %v1944_v8, %v1321_v46 }
 0x1e3   :  { %v1848_v17 = vpop.f32.mrb[5].mxu0 }
 0x1e4   :  { %v2327_v18 = vadd.f32 %v1848_v17, %v638_v16  ;;  %v1850_v19 = vpop.f32.mrb[6].mxu0  ;;  %v1964_v20 = vadd.f32 %v2194_v11, %v1955_v12 }
 0x1e5   :  { %v1851_v13 = vpop.f32.mrb[7].mxu0 }
 0x1e6   :  { %v1954_v14 = vadd.f32 %v2327_v18, %v2325_v62  ;;  %v1966_v22 = vmax.f32 %v1964_v20, 0.0 }
 0x1e8   :  { %v1956_v21 = vadd.f32 %v1954_v14, %v1952_v15 }
 0x1ea   :  { %v1965_v0 = vadd.f32 %v2194_v11, %v1956_v21 }
 0x1ec   :  { %v1967_v23 = vmax.f32 %v1965_v0, 0.0 }
 0x1ee   :  { %v1968_v24 = vadd.f32 %v1967_v23, %v1966_v22  ;;  %v1970_v25 = vmax.f32 %v1966_v22, %v1967_v23 }
 0x1f0   :  { %v1969_v26 = vmul.f32 0.5, %v1968_v24  ;;  %1972 = vst [vmem:[#allocation10 + $0x8] sm:$0xff] %v1970_v25 }
 0x1f2   :  { %1971 = vst [vmem:[#allocation10] sm:$0xff] %v1969_v26 }
 0x1f3   :  { %2722 = shalt.err (!%p2719_p8)
}
 0x1f4   :  { %s2723_s19 = scalar_lea.hbm %s2939_s5, 256 }
 0x1f5   :  { %p2724_p9 = scmp.ne.s32.totalorder %s2939_s5, %s2723_s19  ;;  %p2727_p10 = scmp.lt.u32.totalorder %s2723_s19, %s2939_s5 }
 0x1f7   :  { %p2729_p11 = pnand %p2727_p10, %p2724_p9 }
 0x1f9   :  { %2732 = shalt.err (!%p2729_p11)
}
 0x1fa   :  { %1982 = dma.vmem_to_hbm [thread:$0]  %s1980_s1, 256, %s2939_s5, [#allocation4]  }
 0x1fb   :  { %2739 = dma.done.wait [#allocation4], 256  }
 0x1fc   :  { %2740 = vsyncadd [#allocation4], 4294967040 }
 0x1fd   :  { %1986 = vsyncpa [#allocation3], 1 }
 0x1fe   :  { %1987 = vsyncpa [#allocation6], 1 }
 0x1ff   :  { %1988 = vsyncpa [#allocation9], 1 }
 0x200   :  { %1989 = vsyncpa [#allocation4], 1 }

</bundles_post_ra>
